<compile_context>
chip_gen: v6e
topology: v6e:2x2x1
jax: 0.10.0
libtpu: 0.0.40
codegen_flags: <defaults>
</compile_context>

<pallas_src>
import functools

import numpy as np
import jax
import jax.numpy as jnp
from jax.experimental import pallas as pl
from jax.experimental.pallas import tpu as pltpu


def _cdiv(a, b):
    return -(-a // b)


# --------------------------------------------------------------------------- #
#  Init-time lowering of Conv1d / MaxPool1d / flatten to matmul operands       #
#  (all hoisted out of the forward path).                                      #
# --------------------------------------------------------------------------- #
def _conv_as_matmul(w, l_in, stride):
    """Conv1d weight `w` [Cout, Cin, K] as a dense matrix on a channel-major flattened
    input of per-channel length `l_in`:
        conv(x)[b, co, l] == (x_flat @ M)[b, co*L_out + l]   (bias excluded)."""
    cout, cin, k = w.shape
    l_out = (l_in - k) // stride + 1
    m = np.zeros((cin * l_in, cout * l_out), np.float32)
    for co in range(cout):
        for ci in range(cin):
            for l in range(l_out):
                r0 = ci * l_in + l * stride
                m[r0:r0 + k, co * l_out + l] = w[co, ci, :]
    return m, l_out


def _zero_index(nd, m):
    return (0,) * nd


# --------------------------------------------------------------------------- #
#  Fused kernel                                                                #
# --------------------------------------------------------------------------- #
def _make_fused_kernel(n_conv, widths, kp, n_hidden, eps):
    """widths[t]: number of valid kp-wide window positions over the (full-row) output of
    conv stage t, i.e. inc * C_{t+1} * L_out[t] - kp + 1."""

    def winmax_relu(z, width):
        # Running max over the kp-wide pooling window at every position, then ReLU
        # (relu(max) == max(relu) since relu is monotone).  Window positions that cross
        # channel/covariate boundaries are harmless: their folded-weight rows are zero.
        q = z[:, :width]
        for k in range(1, kp):
            q = jnp.maximum(q, z[:, k:k + width])
        return jnp.maximum(q, 0.0)

    def ln_residual_relu(t, alpha, beta):
        # relu(t + LayerNorm(t)); LayerNorm per the module: unbiased std, eps added to std.
        d = t.shape[-1]
        mu = jnp.mean(t, axis=-1, keepdims=True)
        diff = t - mu
        var = jnp.sum(diff * diff, axis=-1, keepdims=True) * (1.0 / (d - 1))
        std = jnp.sqrt(var) + eps
        ln = diff * pl.reciprocal(std, approx=True) * alpha + beta
        return jnp.maximum(t + ln, 0.0)

    def kernel(*refs):
        it = iter(refs)
        x_ref = next(it)                              # [tile_m, inc*in_dim]  f32
        a0_ref, b0_ref = next(it), next(it)           # conv-0 block-diag matrix / bias
        fold_refs = [(next(it), next(it)) for _ in range(n_conv - 1)]
        f1_ref, bf1_ref = next(it), next(it)          # pool+flatten+FC0 folded matrix / bias
        al0_ref, be0_ref = next(it), next(it)
        hid_refs = [(next(it), next(it), next(it), next(it)) for _ in range(n_hidden - 1)]
        wout_ref, bout_ref = next(it), next(it)
        out_ref = next(it)

        # conv stage 0: one matmul over all covariates (block-diagonal weight).
        z = jnp.dot(x_ref[...].astype(jnp.bfloat16), a0_ref[...],
                    preferred_element_type=jnp.float32) + b0_ref[...]
        # conv stages 1..n_conv-1: window-max + relu once, then one combined matmul
        # (pool stride-selection folded into the weight).
        for t in range(1, n_conv):
            a_ref, b_ref = fold_refs[t - 1]
            q = winmax_relu(z, widths[t - 1]).astype(jnp.bfloat16)
            z = jnp.dot(q, a_ref[...], preferred_element_type=jnp.float32) + b_ref[...]
        # last pool + hstack/flatten + FC layer 0, all folded into f1.
        q = winmax_relu(z, widths[n_conv - 1]).astype(jnp.bfloat16)
        t_act = jnp.dot(q, f1_ref[...], preferred_element_type=jnp.float32) + bf1_ref[...]

        # FeedForward 'advanced'
        t_act = ln_residual_relu(t_act, al0_ref[...], be0_ref[...])
        for (w_ref, b_ref, a_ref, be_ref) in hid_refs:
            t_act = jnp.dot(t_act.astype(jnp.bfloat16), w_ref[...],
                            preferred_element_type=jnp.float32) + b_ref[...]
            t_act = ln_residual_relu(t_act, a_ref[...], be_ref[...])
        out_ref[...] = jnp.dot(t_act.astype(jnp.bfloat16), wout_ref[...],
                               preferred_element_type=jnp.float32) + bout_ref[...]

    return kernel


# --------------------------------------------------------------------------- #
#  Model                                                                       #
# --------------------------------------------------------------------------- #
class CNNPallas:
    def __init__(self, key, inc_nodes=1, in_dim=64, out_dim=24,
                 conv_hidden_channels=(4, 4), fc_hidden=(24, 24),
                 kernel_convolution=8, kernel_pool=4,
                 convolution_stride=1, pool_stride=2):
        assert len(conv_hidden_channels) >= 1 and len(fc_hidden) >= 1
        self.inc_nodes, self.in_dim, self.out_dim = inc_nodes, in_dim, out_dim
        self.kc, self.kp = kernel_convolution, kernel_pool
        self.cs, self.ps = convolution_stride, pool_stride
        self.fc_hidden = list(fc_hidden)
        self.eps = 1e-6
        self.n_pad = _cdiv(out_dim, 128) * 128          # lane-dense output width
        chs = [1] + list(conv_hidden_channels)
        self.chs = chs
        n_conv = len(conv_hidden_channels)
        n_hidden = len(self.fc_hidden)

        # ---- conv geometry (identical for every covariate, as in the PyTorch module) ----
        length = in_dim
        self.L_out, self.L_pool = [], []
        for _ in range(n_conv):
            lo = (length - self.kc) // self.cs + 1
            assert lo >= self.kp, "conv/pool geometry collapses to zero length"
            lp = (lo - self.kp) // self.ps + 1
            self.L_out.append(lo)
            self.L_pool.append(lp)
            length = lp
        out_d = chs[-1] * self.L_pool[-1]
        fc_in_d = inc_nodes * out_d
        fc_dims = [fc_in_d] + self.fc_hidden + [out_dim]
        h1 = self.fc_hidden[0]
        # valid kp-window positions over the full (covariate-major) row after conv stage t
        self.widths = [inc_nodes * chs[t + 1] * self.L_out[t] - self.kp + 1
                       for t in range(n_conv)]

        # ---- raw parameters (PyTorch layouts), deterministic from `key`.
        #      Rounded through bf16 once so the kernel's bf16 weights are exact copies. ----
        n_keys = inc_nodes * n_conv * 2 + (len(fc_dims) - 1) * 2 + n_hidden * 2
        key_it = iter(jax.random.split(key, n_keys))

        def nrm(shape, scale):
            v = scale * jax.random.normal(next(key_it), shape, jnp.float32)
            return np.asarray(v.astype(jnp.bfloat16).astype(jnp.float32))

        self.raw_conv = []
        for _ in range(inc_nodes):
            layers = []
            for t in range(n_conv):
                cin, cout = chs[t], chs[t + 1]
                layers.append((nrm((cout, cin, self.kc), 1.0 / np.sqrt(cin * self.kc)),
                               nrm((cout,), 0.1)))
            self.raw_conv.append(layers)
        self.raw_fc = [(nrm((fc_dims[j + 1], fc_dims[j]), 1.0 / np.sqrt(fc_dims[j])),
                        nrm((fc_dims[j + 1],), 0.1)) for j in range(len(fc_dims) - 1)]
        self.raw_ln = [(nrm((h,), 1.0), nrm((h,), 1.0)) for h in self.fc_hidden]

        # ---- fold everything into matmul-ready, kernel-resident operands (numpy, once) ----
        # conv stage 0: block-diagonal over covariates, K = inc*in_dim
        c1, lo0 = chs[1], self.L_out[0]
        a0 = np.zeros((inc_nodes * in_dim, inc_nodes * c1 * lo0), np.float32)
        b0 = np.zeros((1, inc_nodes * c1 * lo0), np.float32)
        for i in range(inc_nodes):
            w0, bb0 = self.raw_conv[i][0]
            m0, _ = _conv_as_matmul(w0, in_dim, self.cs)
            a0[i * in_dim:(i + 1) * in_dim, i * c1 * lo0:(i + 1) * c1 * lo0] = m0
            b0[0, i * c1 * lo0:(i + 1) * c1 * lo0] = np.repeat(bb0, lo0)

        # conv stages 1..n_conv-1: pool stride-selection + covariate/channel block structure
        # folded into a single [widths[t-1], inc*C_{t+1}*L_out[t]] matrix.
        folds = []
        for t in range(1, n_conv):
            c_in, c_out = chs[t], chs[t + 1]
            lo_prev, lp_prev, lo_t = self.L_out[t - 1], self.L_pool[t - 1], self.L_out[t]
            fold = np.zeros((self.widths[t - 1], inc_nodes * c_out * lo_t), np.float32)
            bt = np.zeros((1, inc_nodes * c_out * lo_t), np.float32)
            for i in range(inc_nodes):
                wt, bbt = self.raw_conv[i][t]
                mt, _ = _conv_as_matmul(wt, lp_prev, self.cs)   # [c_in*lp_prev, c_out*lo_t]
                col0 = i * c_out * lo_t
                for ci in range(c_in):
                    for p in range(lp_prev):
                        row = i * c_in * lo_prev + ci * lo_prev + self.ps * p
                        fold[row, col0:col0 + c_out * lo_t] = mt[ci * lp_prev + p, :]
                bt[0, col0:col0 + c_out * lo_t] = np.repeat(bbt, lo_t)
            folds.append((fold, bt))

        # last pool + torch.hstack + flatten + FC layer 0, folded into one matrix
        w_fc0, b_fc0 = self.raw_fc[0]                   # [H1, fc_in_d]
        c_last, lo_last, lp_last = chs[-1], self.L_out[-1], self.L_pool[-1]
        f1 = np.zeros((self.widths[-1], h1), np.float32)
        for i in range(inc_nodes):
            for c in range(c_last):
                for p in range(lp_last):
                    row = i * c_last * lo_last + c * lo_last + self.ps * p
                    col = i * c_last * lp_last + c * lp_last + p
                    f1[row, :] = w_fc0[:, col]

        bf16 = jnp.bfloat16
        params = [jnp.asarray(a0, bf16), jnp.asarray(b0)]
        for fold, bt in folds:
            params += [jnp.asarray(fold, bf16), jnp.asarray(bt)]
        params += [jnp.asarray(f1, bf16), jnp.asarray(b_fc0)[None, :],
                   jnp.asarray(self.raw_ln[0][0])[None, :],
                   jnp.asarray(self.raw_ln[0][1])[None, :]]
        for j in range(1, n_hidden):
            wj, bj = self.raw_fc[j]
            params += [jnp.asarray(wj.T, bf16), jnp.asarray(bj)[None, :],
                       jnp.asarray(self.raw_ln[j][0])[None, :],
                       jnp.asarray(self.raw_ln[j][1])[None, :]]
        wo, bo = self.raw_fc[-1]
        wo_pad = np.zeros((wo.shape[1], self.n_pad), np.float32)
        wo_pad[:, :out_dim] = wo.T
        bo_pad = np.zeros((1, self.n_pad), np.float32)
        bo_pad[0, :out_dim] = bo
        params += [jnp.asarray(wo_pad, bf16), jnp.asarray(bo_pad)]
        self._kernel_params = params

        self._kernel = _make_fused_kernel(n_conv=n_conv, widths=tuple(self.widths),
                                          kp=self.kp, n_hidden=n_hidden, eps=self.eps)
        self._forward_jit = jax.jit(self._forward)

    # ------------------------------------------------------------------ #
    def _forward(self, x):
        b = x.shape[0]
        if b < 16:
            grid_n = 1
            tile_m = max(8, _cdiv(b, 8) * 8)
        else:
            # >=2 grid steps so the "parallel" batch axis can shard across TensorCores (v7x);
            # tiles capped near 512 rows to amortize per-step pipeline overhead.
            grid_n = max(2, _cdiv(b, 512))
            tile_m = _cdiv(_cdiv(b, grid_n), 8) * 8
        bp = grid_n * tile_m

        # Contiguous covariate-major flatten of x — no HBM-materializing transpose.
        xf = x.astype(jnp.float32).reshape(b, self.inc_nodes * self.in_dim)
        if bp != b:
            xf = jnp.pad(xf, ((0, bp - b), (0, 0)))

        x_spec = pl.BlockSpec((tile_m, self.inc_nodes * self.in_dim), lambda m: (m, 0))
        w_specs = [pl.BlockSpec(p.shape, functools.partial(_zero_index, p.ndim))
                   for p in self._kernel_params]
        out_spec = pl.BlockSpec((tile_m, self.n_pad), lambda m: (m, 0))

        out_pad = pl.pallas_call(
            self._kernel,
            grid=(grid_n,),
            out_shape=jax.ShapeDtypeStruct((bp, self.n_pad), jnp.float32),
            in_specs=[x_spec] + w_specs,
            out_specs=out_spec,
            compiler_params=pltpu.CompilerParams(dimension_semantics=("parallel",)),
        )(xf, *self._kernel_params)
        return out_pad[:b, :self.out_dim].reshape(b, 1, self.out_dim)

    def forward(self, x):
        return self._forward_jit(x)


# --------------------------------------------------------------------------- #
#  Pure-JAX reference (direct transcription of the PyTorch forward)            #
# --------------------------------------------------------------------------- #
def _conv1d_ref(t, w, b, stride):
    cout, cin, k = w.shape
    l_out = (t.shape[2] - k) // stride + 1
    acc = jnp.zeros((t.shape[0], cout, l_out), jnp.float32)
    for kk in range(k):
        xs = t[:, :, kk: kk + (l_out - 1) * stride + 1: stride]
        acc = acc + jnp.einsum('bcl,oc->bol', xs, w[:, :, kk], precision='highest')
    return acc + b[None, :, None]


def _maxpool1d_ref(t, k, s):
    l_out = (t.shape[2] - k) // s + 1
    return jnp.stack([t[:, :, j * s: j * s + k].max(axis=2) for j in range(l_out)], axis=2)


def reference_forward(model, x):
    b = x.shape[0]
    outs = []
    for i in range(model.inc_nodes):
        t = x[:, i, :][:, None, :]
        for (w, bb) in model.raw_conv[i]:
            t = _maxpool1d_ref(jax.nn.relu(_conv1d_ref(t, w, bb, model.cs)),
                               model.kp, model.ps)
        outs.append(t)
    t = jnp.concatenate(outs, axis=1).reshape(b, -1)   # torch.hstack + flatten
    for j in range(len(model.fc_hidden)):
        w, bb = model.raw_fc[j]
        t = jnp.dot(t, w.T, precision='highest') + bb
        alpha, beta = model.raw_ln[j]
        mu = jnp.mean(t, axis=-1, keepdims=True)
        std = jnp.std(t, axis=-1, keepdims=True, ddof=1) + model.eps
        t = jax.nn.relu(t + (t - mu) / std * alpha + beta)
    w, bb = model.raw_fc[-1]
    return (jnp.dot(t, w.T, precision='highest') + bb).reshape(b, 1, model.out_dim)


# --------------------------------------------------------------------------- #
if __name__ == "__main__":
    key = jax.random.PRNGKey(0)
    key_params, key_x = jax.random.split(key)

    inc_nodes, in_dim, out_dim, batch = 2, 64, 24, 4
    model = CNNPallas(key_params, inc_nodes=inc_nodes, in_dim=in_dim, out_dim=out_dim,
                      conv_hidden_channels=(4, 4), fc_hidden=(24, 24),
                      kernel_convolution=8, kernel_pool=4,
                      convolution_stride=1, pool_stride=2)
    x = jax.random.normal(key_x, (batch, inc_nodes, in_dim), jnp.float32)

    y = jax.block_until_ready(model.forward(x))
    y_ref = jax.block_until_ready(reference_forward(model, x))

    assert y.shape == (batch, 1, out_dim)
    np.testing.assert_allclose(np.asarray(y), np.asarray(y_ref), rtol=2e-2, atol=2e-2)
    print("KERNEL_OK")
</pallas_src>

<mosaic_0001>
module attributes {stable_mosaic.version = 11 : i64} {
  func.func @kernel(%arg0: i32, %arg1: memref<8x128xf32, #tpu.memory_space<vmem>>, %arg2: memref<128x456xbf16, #tpu.memory_space<vmem>>, %arg3: memref<1x456xf32, #tpu.memory_space<vmem>>, %arg4: memref<453x160xbf16, #tpu.memory_space<vmem>>, %arg5: memref<1x160xf32, #tpu.memory_space<vmem>>, %arg6: memref<157x24xbf16, #tpu.memory_space<vmem>>, %arg7: memref<1x24xf32, #tpu.memory_space<vmem>>, %arg8: memref<1x24xf32, #tpu.memory_space<vmem>>, %arg9: memref<1x24xf32, #tpu.memory_space<vmem>>, %arg10: memref<24x24xbf16, #tpu.memory_space<vmem>>, %arg11: memref<1x24xf32, #tpu.memory_space<vmem>>, %arg12: memref<1x24xf32, #tpu.memory_space<vmem>>, %arg13: memref<1x24xf32, #tpu.memory_space<vmem>>, %arg14: memref<24x128xbf16, #tpu.memory_space<vmem>>, %arg15: memref<1x128xf32, #tpu.memory_space<vmem>>, %arg16: memref<8x128xf32, #tpu.memory_space<vmem>>) attributes {dimension_semantics = [#tpu.dimension_semantics<parallel>], iteration_bounds = array<i64: 1>, scalar_prefetch = 0 : i64, scratch_operands = 0 : i64, tpu.core_type = #tpu.core_type<tc>, window_params = [{transform_indices = @transform_0, window_bounds = array<i64: 8, 128>}, {pipeline_mode = #tpu.pipeline_mode<synchronous>, transform_indices = @transform_1, window_bounds = array<i64: 128, 456>}, {pipeline_mode = #tpu.pipeline_mode<synchronous>, transform_indices = @transform_2, window_bounds = array<i64: 1, 456>}, {pipeline_mode = #tpu.pipeline_mode<synchronous>, transform_indices = @transform_3, window_bounds = array<i64: 453, 160>}, {pipeline_mode = #tpu.pipeline_mode<synchronous>, transform_indices = @transform_4, window_bounds = array<i64: 1, 160>}, {pipeline_mode = #tpu.pipeline_mode<synchronous>, transform_indices = @transform_5, window_bounds = array<i64: 157, 24>}, {pipeline_mode = #tpu.pipeline_mode<synchronous>, transform_indices = @transform_6, window_bounds = array<i64: 1, 24>}, {pipeline_mode = #tpu.pipeline_mode<synchronous>, transform_indices = @transform_7, window_bounds = array<i64: 1, 24>}, {pipeline_mode = #tpu.pipeline_mode<synchronous>, transform_indices = @transform_8, window_bounds = array<i64: 1, 24>}, {pipeline_mode = #tpu.pipeline_mode<synchronous>, transform_indices = @transform_9, window_bounds = array<i64: 24, 24>}, {pipeline_mode = #tpu.pipeline_mode<synchronous>, transform_indices = @transform_10, window_bounds = array<i64: 1, 24>}, {pipeline_mode = #tpu.pipeline_mode<synchronous>, transform_indices = @transform_11, window_bounds = array<i64: 1, 24>}, {pipeline_mode = #tpu.pipeline_mode<synchronous>, transform_indices = @transform_12, window_bounds = array<i64: 1, 24>}, {pipeline_mode = #tpu.pipeline_mode<synchronous>, transform_indices = @transform_13, window_bounds = array<i64: 24, 128>}, {pipeline_mode = #tpu.pipeline_mode<synchronous>, transform_indices = @transform_14, window_bounds = array<i64: 1, 128>}, {transform_indices = @transform_15, window_bounds = array<i64: 8, 128>}]} {
    %c0 = arith.constant 0 : index
    %c0_0 = arith.constant 0 : index
    %0 = vector.load %arg1[%c0, %c0_0] : memref<8x128xf32, #tpu.memory_space<vmem>>, vector<8x128xf32>
    %1 = arith.truncf %0 : vector<8x128xf32> to vector<8x128xbf16>
    %c0_1 = arith.constant 0 : index
    %c0_2 = arith.constant 0 : index
    %2 = vector.load %arg2[%c0_1, %c0_2] : memref<128x456xbf16, #tpu.memory_space<vmem>>, vector<128x456xbf16>
    %cst = arith.constant dense<0.000000e+00> : vector<8x456xf32>
    %3 = tpu.matmul %1, %2, %cst {dimension_numbers = #tpu.dot_dimension_numbers<[1], [0], [0], [1], [0, 0, 1, 1], [], []>} : vector<8x128xbf16>, vector<128x456xbf16>, vector<8x456xf32> -> vector<8x456xf32>
    %c0_3 = arith.constant 0 : index
    %c0_4 = arith.constant 0 : index
    %4 = vector.load %arg3[%c0_3, %c0_4] : memref<1x456xf32, #tpu.memory_space<vmem>>, vector<1x456xf32>
    %5 = vector.broadcast %4 : vector<1x456xf32> to vector<8x456xf32>
    %6 = arith.addf %3, %5 : vector<8x456xf32>
    %7 = vector.extract_strided_slice %6 {offsets = [0, 0], sizes = [8, 453], strides = [1, 1]} : vector<8x456xf32> to vector<8x453xf32>
    %8 = vector.extract_strided_slice %6 {offsets = [0, 1], sizes = [8, 453], strides = [1, 1]} : vector<8x456xf32> to vector<8x453xf32>
    %9 = arith.maximumf %7, %8 : vector<8x453xf32>
    %10 = vector.extract_strided_slice %6 {offsets = [0, 2], sizes = [8, 453], strides = [1, 1]} : vector<8x456xf32> to vector<8x453xf32>
    %11 = arith.maximumf %9, %10 : vector<8x453xf32>
    %12 = vector.extract_strided_slice %6 {offsets = [0, 3], sizes = [8, 453], strides = [1, 1]} : vector<8x456xf32> to vector<8x453xf32>
    %13 = arith.maximumf %11, %12 : vector<8x453xf32>
    %cst_5 = arith.constant 0.000000e+00 : f32
    %14 = vector.broadcast %cst_5 : f32 to vector<8x453xf32>
    %15 = arith.maximumf %13, %14 : vector<8x453xf32>
    %16 = arith.truncf %15 : vector<8x453xf32> to vector<8x453xbf16>
    %c0_6 = arith.constant 0 : index
    %c0_7 = arith.constant 0 : index
    %17 = vector.load %arg4[%c0_6, %c0_7] : memref<453x160xbf16, #tpu.memory_space<vmem>>, vector<453x160xbf16>
    %cst_8 = arith.constant dense<0.000000e+00> : vector<8x160xf32>
    %18 = tpu.matmul %16, %17, %cst_8 {dimension_numbers = #tpu.dot_dimension_numbers<[1], [0], [0], [1], [0, 0, 1, 1], [], []>} : vector<8x453xbf16>, vector<453x160xbf16>, vector<8x160xf32> -> vector<8x160xf32>
    %c0_9 = arith.constant 0 : index
    %c0_10 = arith.constant 0 : index
    %19 = vector.load %arg5[%c0_9, %c0_10] : memref<1x160xf32, #tpu.memory_space<vmem>>, vector<1x160xf32>
    %20 = vector.broadcast %19 : vector<1x160xf32> to vector<8x160xf32>
    %21 = arith.addf %18, %20 : vector<8x160xf32>
    %22 = vector.extract_strided_slice %21 {offsets = [0, 0], sizes = [8, 157], strides = [1, 1]} : vector<8x160xf32> to vector<8x157xf32>
    %23 = vector.extract_strided_slice %21 {offsets = [0, 1], sizes = [8, 157], strides = [1, 1]} : vector<8x160xf32> to vector<8x157xf32>
    %24 = arith.maximumf %22, %23 : vector<8x157xf32>
    %25 = vector.extract_strided_slice %21 {offsets = [0, 2], sizes = [8, 157], strides = [1, 1]} : vector<8x160xf32> to vector<8x157xf32>
    %26 = arith.maximumf %24, %25 : vector<8x157xf32>
    %27 = vector.extract_strided_slice %21 {offsets = [0, 3], sizes = [8, 157], strides = [1, 1]} : vector<8x160xf32> to vector<8x157xf32>
    %28 = arith.maximumf %26, %27 : vector<8x157xf32>
    %cst_11 = arith.constant 0.000000e+00 : f32
    %29 = vector.broadcast %cst_11 : f32 to vector<8x157xf32>
    %30 = arith.maximumf %28, %29 : vector<8x157xf32>
    %31 = arith.truncf %30 : vector<8x157xf32> to vector<8x157xbf16>
    %c0_12 = arith.constant 0 : index
    %c0_13 = arith.constant 0 : index
    %32 = vector.load %arg6[%c0_12, %c0_13] : memref<157x24xbf16, #tpu.memory_space<vmem>>, vector<157x24xbf16>
    %cst_14 = arith.constant dense<0.000000e+00> : vector<8x24xf32>
    %33 = tpu.matmul %31, %32, %cst_14 {dimension_numbers = #tpu.dot_dimension_numbers<[1], [0], [0], [1], [0, 0, 1, 1], [], []>} : vector<8x157xbf16>, vector<157x24xbf16>, vector<8x24xf32> -> vector<8x24xf32>
    %c0_15 = arith.constant 0 : index
    %c0_16 = arith.constant 0 : index
    %34 = vector.load %arg7[%c0_15, %c0_16] : memref<1x24xf32, #tpu.memory_space<vmem>>, vector<1x24xf32>
    %35 = vector.broadcast %34 : vector<1x24xf32> to vector<8x24xf32>
    %36 = arith.addf %33, %35 : vector<8x24xf32>
    %c0_17 = arith.constant 0 : index
    %c0_18 = arith.constant 0 : index
    %37 = vector.load %arg8[%c0_17, %c0_18] : memref<1x24xf32, #tpu.memory_space<vmem>>, vector<1x24xf32>
    %c0_19 = arith.constant 0 : index
    %c0_20 = arith.constant 0 : index
    %38 = vector.load %arg9[%c0_19, %c0_20] : memref<1x24xf32, #tpu.memory_space<vmem>>, vector<1x24xf32>
    %cst_21 = arith.constant dense<0.000000e+00> : vector<8xf32>
    %39 = vector.multi_reduction <add>, %36, %cst_21 [1] : vector<8x24xf32> to vector<8xf32>
    %40 = vector.shape_cast %39 : vector<8xf32> to vector<8x1xf32>
    %cst_22 = arith.constant 2.400000e+01 : f32
    %41 = vector.broadcast %cst_22 : f32 to vector<8x1xf32>
    %42 = arith.divf %40, %41 : vector<8x1xf32>
    %43 = vector.broadcast %42 : vector<8x1xf32> to vector<8x24xf32>
    %44 = arith.subf %36, %43 : vector<8x24xf32>
    %45 = arith.mulf %44, %44 : vector<8x24xf32>
    %cst_23 = arith.constant dense<0.000000e+00> : vector<8xf32>
    %46 = vector.multi_reduction <add>, %45, %cst_23 [1] : vector<8x24xf32> to vector<8xf32>
    %47 = vector.shape_cast %46 : vector<8xf32> to vector<8x1xf32>
    %cst_24 = arith.constant 0.0434782617 : f32
    %48 = vector.broadcast %cst_24 : f32 to vector<8x1xf32>
    %49 = arith.mulf %47, %48 : vector<8x1xf32>
    %50 = math.sqrt %49 : vector<8x1xf32>
    %cst_25 = arith.constant 9.99999997E-7 : f32
    %51 = vector.broadcast %cst_25 : f32 to vector<8x1xf32>
    %52 = arith.addf %50, %51 : vector<8x1xf32>
    %53 = tpu.reciprocal %52 {approx = true} : vector<8x1xf32> -> vector<8x1xf32>
    %54 = vector.broadcast %53 : vector<8x1xf32> to vector<8x24xf32>
    %55 = arith.mulf %44, %54 : vector<8x24xf32>
    %56 = vector.broadcast %37 : vector<1x24xf32> to vector<8x24xf32>
    %57 = arith.mulf %55, %56 : vector<8x24xf32>
    %58 = vector.broadcast %38 : vector<1x24xf32> to vector<8x24xf32>
    %59 = arith.addf %57, %58 : vector<8x24xf32>
    %60 = arith.addf %36, %59 : vector<8x24xf32>
    %cst_26 = arith.constant 0.000000e+00 : f32
    %61 = vector.broadcast %cst_26 : f32 to vector<8x24xf32>
    %62 = arith.maximumf %60, %61 : vector<8x24xf32>
    %63 = arith.truncf %62 : vector<8x24xf32> to vector<8x24xbf16>
    %c0_27 = arith.constant 0 : index
    %c0_28 = arith.constant 0 : index
    %64 = vector.load %arg10[%c0_27, %c0_28] : memref<24x24xbf16, #tpu.memory_space<vmem>>, vector<24x24xbf16>
    %cst_29 = arith.constant dense<0.000000e+00> : vector<8x24xf32>
    %65 = tpu.matmul %63, %64, %cst_29 {dimension_numbers = #tpu.dot_dimension_numbers<[1], [0], [0], [1], [0, 0, 1, 1], [], []>} : vector<8x24xbf16>, vector<24x24xbf16>, vector<8x24xf32> -> vector<8x24xf32>
    %c0_30 = arith.constant 0 : index
    %c0_31 = arith.constant 0 : index
    %66 = vector.load %arg11[%c0_30, %c0_31] : memref<1x24xf32, #tpu.memory_space<vmem>>, vector<1x24xf32>
    %67 = vector.broadcast %66 : vector<1x24xf32> to vector<8x24xf32>
    %68 = arith.addf %65, %67 : vector<8x24xf32>
    %c0_32 = arith.constant 0 : index
    %c0_33 = arith.constant 0 : index
    %69 = vector.load %arg12[%c0_32, %c0_33] : memref<1x24xf32, #tpu.memory_space<vmem>>, vector<1x24xf32>
    %c0_34 = arith.constant 0 : index
    %c0_35 = arith.constant 0 : index
    %70 = vector.load %arg13[%c0_34, %c0_35] : memref<1x24xf32, #tpu.memory_space<vmem>>, vector<1x24xf32>
    %cst_36 = arith.constant dense<0.000000e+00> : vector<8xf32>
    %71 = vector.multi_reduction <add>, %68, %cst_36 [1] : vector<8x24xf32> to vector<8xf32>
    %72 = vector.shape_cast %71 : vector<8xf32> to vector<8x1xf32>
    %cst_37 = arith.constant 2.400000e+01 : f32
    %73 = vector.broadcast %cst_37 : f32 to vector<8x1xf32>
    %74 = arith.divf %72, %73 : vector<8x1xf32>
    %75 = vector.broadcast %74 : vector<8x1xf32> to vector<8x24xf32>
    %76 = arith.subf %68, %75 : vector<8x24xf32>
    %77 = arith.mulf %76, %76 : vector<8x24xf32>
    %cst_38 = arith.constant dense<0.000000e+00> : vector<8xf32>
    %78 = vector.multi_reduction <add>, %77, %cst_38 [1] : vector<8x24xf32> to vector<8xf32>
    %79 = vector.shape_cast %78 : vector<8xf32> to vector<8x1xf32>
    %cst_39 = arith.constant 0.0434782617 : f32
    %80 = vector.broadcast %cst_39 : f32 to vector<8x1xf32>
    %81 = arith.mulf %79, %80 : vector<8x1xf32>
    %82 = math.sqrt %81 : vector<8x1xf32>
    %cst_40 = arith.constant 9.99999997E-7 : f32
    %83 = vector.broadcast %cst_40 : f32 to vector<8x1xf32>
    %84 = arith.addf %82, %83 : vector<8x1xf32>
    %85 = tpu.reciprocal %84 {approx = true} : vector<8x1xf32> -> vector<8x1xf32>
    %86 = vector.broadcast %85 : vector<8x1xf32> to vector<8x24xf32>
    %87 = arith.mulf %76, %86 : vector<8x24xf32>
    %88 = vector.broadcast %69 : vector<1x24xf32> to vector<8x24xf32>
    %89 = arith.mulf %87, %88 : vector<8x24xf32>
    %90 = vector.broadcast %70 : vector<1x24xf32> to vector<8x24xf32>
    %91 = arith.addf %89, %90 : vector<8x24xf32>
    %92 = arith.addf %68, %91 : vector<8x24xf32>
    %cst_41 = arith.constant 0.000000e+00 : f32
    %93 = vector.broadcast %cst_41 : f32 to vector<8x24xf32>
    %94 = arith.maximumf %92, %93 : vector<8x24xf32>
    %95 = arith.truncf %94 : vector<8x24xf32> to vector<8x24xbf16>
    %c0_42 = arith.constant 0 : index
    %c0_43 = arith.constant 0 : index
    %96 = vector.load %arg14[%c0_42, %c0_43] : memref<24x128xbf16, #tpu.memory_space<vmem>>, vector<24x128xbf16>
    %cst_44 = arith.constant dense<0.000000e+00> : vector<8x128xf32>
    %97 = tpu.matmul %95, %96, %cst_44 {dimension_numbers = #tpu.dot_dimension_numbers<[1], [0], [0], [1], [0, 0, 1, 1], [], []>} : vector<8x24xbf16>, vector<24x128xbf16>, vector<8x128xf32> -> vector<8x128xf32>
    %c0_45 = arith.constant 0 : index
    %c0_46 = arith.constant 0 : index
    %98 = vector.load %arg15[%c0_45, %c0_46] : memref<1x128xf32, #tpu.memory_space<vmem>>, vector<1x128xf32>
    %99 = vector.broadcast %98 : vector<1x128xf32> to vector<8x128xf32>
    %100 = arith.addf %97, %99 : vector<8x128xf32>
    %c0_47 = arith.constant 0 : index
    %c0_48 = arith.constant 0 : index
    %101 = vector.load %arg16[%c0_47, %c0_48] : memref<8x128xf32, #tpu.memory_space<vmem>>, vector<8x128xf32>
    tpu.vector_store %arg16[%c0_47, %c0_48], %100 {strides = array<i32>} : memref<8x128xf32, #tpu.memory_space<vmem>>, vector<8x128xf32>,
    return
  }
  func.func @transform_0(%arg0: i32) -> (i32, i32) {
    %c0_i32 = arith.constant 0 : i32
    %c0_i32_0 = arith.constant 0 : i32
    return %arg0, %c0_i32 : i32, i32
  }
  func.func @transform_1(%arg0: i32) -> (i32, i32) {
    %c0_i32 = arith.constant 0 : i32
    %c0_i32_0 = arith.constant 0 : i32
    %c0_i32_1 = arith.constant 0 : i32
    return %c0_i32, %c0_i32_0 : i32, i32
  }
  func.func @transform_2(%arg0: i32) -> (i32, i32) {
    %c0_i32 = arith.constant 0 : i32
    %c0_i32_0 = arith.constant 0 : i32
    %c0_i32_1 = arith.constant 0 : i32
    return %c0_i32, %c0_i32_0 : i32, i32
  }
  func.func @transform_3(%arg0: i32) -> (i32, i32) {
    %c0_i32 = arith.constant 0 : i32
    %c0_i32_0 = arith.constant 0 : i32
    %c0_i32_1 = arith.constant 0 : i32
    return %c0_i32, %c0_i32_0 : i32, i32
  }
  func.func @transform_4(%arg0: i32) -> (i32, i32) {
    %c0_i32 = arith.constant 0 : i32
    %c0_i32_0 = arith.constant 0 : i32
    %c0_i32_1 = arith.constant 0 : i32
    return %c0_i32, %c0_i32_0 : i32, i32
  }
  func.func @transform_5(%arg0: i32) -> (i32, i32) {
    %c0_i32 = arith.constant 0 : i32
    %c0_i32_0 = arith.constant 0 : i32
    %c0_i32_1 = arith.constant 0 : i32
    return %c0_i32, %c0_i32_0 : i32, i32
  }
  func.func @transform_6(%arg0: i32) -> (i32, i32) {
    %c0_i32 = arith.constant 0 : i32
    %c0_i32_0 = arith.constant 0 : i32
    %c0_i32_1 = arith.constant 0 : i32
    return %c0_i32, %c0_i32_0 : i32, i32
  }
  func.func @transform_7(%arg0: i32) -> (i32, i32) {
    %c0_i32 = arith.constant 0 : i32
    %c0_i32_0 = arith.constant 0 : i32
    %c0_i32_1 = arith.constant 0 : i32
    return %c0_i32, %c0_i32_0 : i32, i32
  }
  func.func @transform_8(%arg0: i32) -> (i32, i32) {
    %c0_i32 = arith.constant 0 : i32
    %c0_i32_0 = arith.constant 0 : i32
    %c0_i32_1 = arith.constant 0 : i32
    return %c0_i32, %c0_i32_0 : i32, i32
  }
  func.func @transform_9(%arg0: i32) -> (i32, i32) {
    %c0_i32 = arith.constant 0 : i32
    %c0_i32_0 = arith.constant 0 : i32
    %c0_i32_1 = arith.constant 0 : i32
    return %c0_i32, %c0_i32_0 : i32, i32
  }
  func.func @transform_10(%arg0: i32) -> (i32, i32) {
    %c0_i32 = arith.constant 0 : i32
    %c0_i32_0 = arith.constant 0 : i32
    %c0_i32_1 = arith.constant 0 : i32
    return %c0_i32, %c0_i32_0 : i32, i32
  }
  func.func @transform_11(%arg0: i32) -> (i32, i32) {
    %c0_i32 = arith.constant 0 : i32
    %c0_i32_0 = arith.constant 0 : i32
    %c0_i32_1 = arith.constant 0 : i32
    return %c0_i32, %c0_i32_0 : i32, i32
  }
  func.func @transform_12(%arg0: i32) -> (i32, i32) {
    %c0_i32 = arith.constant 0 : i32
    %c0_i32_0 = arith.constant 0 : i32
    %c0_i32_1 = arith.constant 0 : i32
    return %c0_i32, %c0_i32_0 : i32, i32
  }
  func.func @transform_13(%arg0: i32) -> (i32, i32) {
    %c0_i32 = arith.constant 0 : i32
    %c0_i32_0 = arith.constant 0 : i32
    %c0_i32_1 = arith.constant 0 : i32
    return %c0_i32, %c0_i32_0 : i32, i32
  }
  func.func @transform_14(%arg0: i32) -> (i32, i32) {
    %c0_i32 = arith.constant 0 : i32
    %c0_i32_0 = arith.constant 0 : i32
    %c0_i32_1 = arith.constant 0 : i32
    return %c0_i32, %c0_i32_0 : i32, i32
  }
  func.func @transform_15(%arg0: i32) -> (i32, i32) {
    %c0_i32 = arith.constant 0 : i32
    %c0_i32_0 = arith.constant 0 : i32
    return %arg0, %c0_i32 : i32, i32
  }
}

</mosaic_0001>

<bundles_post_ra>
// kernel: _forward.1
= control target key start
LH: loop header
LB: loop body
LE: loop exit
PB: predicated region body
PF: predicated region fallthrough
CT: control target
= control target key end

     0   :  { %20 = vsyncpa [#allocation3], 0  ;;  %s1968_s0 = inlined_call_operand.vmem [shape: f32[8,128], index: 0, kind: input, shape index: {}]   ;;  %s1969_s1 = inlined_call_operand.hbm [shape: bf16[128,456], index: 1, kind: input, shape index: {}]   ;;  %s1970_s2 = inlined_call_operand.vmem [shape: f32[1,456], index: 2, kind: input, shape index: {}]   ;;  %s1971_s3 = inlined_call_operand.hbm [shape: bf16[453,160], index: 3, kind: input, shape index: {}]   ;;  %s1972_s4 = inlined_call_operand.vmem [shape: f32[1,160], index: 4, kind: input, shape index: {}]   ;;  %s1973_s5 = inlined_call_operand.hbm [shape: bf16[157,24], index: 5, kind: input, shape index: {}]   ;;  %s1974_s6 = inlined_call_operand.hbm [shape: f32[1,24], index: 6, kind: input, shape index: {}]   ;;  %s1975_s7 = inlined_call_operand.vmem [shape: f32[1,24], index: 7, kind: input, shape index: {}]   ;;  %s1976_s8 = inlined_call_operand.vmem [shape: f32[1,24], index: 8, kind: input, shape index: {}]   ;;  %s1977_s9 = inlined_call_operand.vmem [shape: bf16[24,24], index: 9, kind: input, shape index: {}]   ;;  %s1978_s10 = inlined_call_operand.vmem [shape: f32[1,24], index: 10, kind: input, shape index: {}]   ;;  %s1979_s11 = inlined_call_operand.vmem [shape: f32[1,24], index: 11, kind: input, shape index: {}]   ;;  %s1980_s12 = inlined_call_operand.vmem [shape: f32[1,24], index: 12, kind: input, shape index: {}]   ;;  %s1981_s13 = inlined_call_operand.vmem [shape: bf16[24,128], index: 13, kind: input, shape index: {}]   ;;  %s1982_s14 = inlined_call_operand.vmem [shape: f32[1,128], index: 14, kind: input, shape index: {}]   ;;  %s1983_s15 = inlined_call_operand.vmem [shape: f32[8,128], index: 15, kind: output, shape index: {}]  }
   0x1   :  { %21 = vsyncpa [#allocation5], 0 }
   0x2   :  { %22 = vsyncpa [#allocation8], 0  ;;  %s1749_s18 = smov [#allocation4]  }
   0x3   :  { %s44_s19 = sshll.u32 %s1749_s18, 4  ;;  %s45_s19 = int_to_ptr.vmem [resolvable:$true] %s44_s19 }
   0x4   :  { %s1671_s20 = scalar_lea.vmem %s45_s19, 7296  ;;  %p1676_p1 = scmp.lt.s32.totalorder %s45_s19, %s45_s19 }
   0x5   :  { %p1672_p0 = scmp.ne.s32.totalorder %s45_s19, %s1671_s20  ;;  %p1677_p2 = scmp.lt.s32.totalorder %s1671_s20, %s1671_s20 }
   0x7   :  { %p1678_p3 = por %p1677_p2, %p1676_p1 }
   0x9   :  { %p1679_p4 = pnand %p1678_p3, %p1672_p0 }
   0xb   :  { %1682 = shalt.err (!%p1679_p4)
}
   0xc   :  { %s1750_s21 = smov 128   ;;  %s1751_s22 = smov 8  }
   0xd   :  { %50 = dma.hbm_to_vmem [thread:$0]  %s1971_s3, 7296, %s45_s19, [#allocation5], %s1750_s21, %s1750_s21, %s1751_s22  }
   0xe   :  { %s1752_s25 = smov [#allocation2]  }
   0xf   :  { %s30_s26 = sshll.u32 %s1752_s25, 4  ;;  %s31_s26 = int_to_ptr.vmem [resolvable:$true] %s30_s26 }
  0x10   :  { %s1691_s27 = scalar_lea.vmem %s31_s26, 4096  ;;  %p1696_p6 = scmp.lt.s32.totalorder %s31_s26, %s31_s26 }
  0x11   :  { %p1692_p5 = scmp.ne.s32.totalorder %s31_s26, %s1691_s27  ;;  %p1697_p7 = scmp.lt.s32.totalorder %s1691_s27, %s1691_s27 }
  0x13   :  { %p1698_p8 = por %p1697_p7, %p1696_p6 }
  0x15   :  { %p1699_p9 = pnand %p1698_p8, %p1692_p5 }
  0x17   :  { %1702 = shalt.err (!%p1699_p9)
}
  0x18   :  { %s1753_s28 = smov 256   ;;  %s1754_s29 = smov 16  }
  0x19   :  { %36 = dma.hbm_to_vmem [thread:$0]  %s1969_s1, 4096, %s31_s26, [#allocation3], %s1753_s28, %s1753_s28, %s1754_s29  }
  0x1a   :  { %s1755_s17 = smov [#allocation6]  }
  0x1b   :  { %s58_s18 = sshll.u32 %s1755_s17, 4  ;;  %s59_s18 = int_to_ptr.vmem [resolvable:$true] %s58_s18 }
  0x1c   :  { %s1711_s3 = scalar_lea.vmem %s59_s18, 1280  ;;  %p1716_p11 = scmp.lt.s32.totalorder %s59_s18, %s59_s18 }
  0x1d   :  { %p1712_p10 = scmp.ne.s32.totalorder %s59_s18, %s1711_s3  ;;  %p1717_p12 = scmp.lt.s32.totalorder %s1711_s3, %s1711_s3 }
  0x1f   :  { %p1718_p13 = por %p1717_p12, %p1716_p11 }
  0x21   :  { %p1719_p0 = pnand %p1718_p13, %p1712_p10 }
  0x23   :  { %1722 = shalt.err (!%p1719_p0)
}
  0x24   :  { %s1756_s19 = smov 64   ;;  %s1757_s20 = smov 4  }
  0x25   :  { %64 = dma.hbm_to_vmem [thread:$0]  %s1973_s5, 1280, %s59_s18, [#allocation5], %s1756_s19, %s1756_s19, %s1757_s20  }
  0x26   :  { %s1758_s23 = smov [#allocation7]  }
  0x27   :  { %s71_s24 = sshll.u32 %s1758_s23, 4  ;;  %s72_s24 = int_to_ptr.vmem [resolvable:$true] %s71_s24 }
  0x28   :  { %s1731_s1 = scalar_lea.vmem %s72_s24, 16  ;;  %s1735_s25 = scalar_lea.vmem %s72_s24, 32 }
  0x29   :  { %p1732_p1 = scmp.ne.s32.totalorder %s72_s24, %s1731_s1  ;;  %p1736_p2 = scmp.lt.s32.totalorder %s72_s24, %s72_s24 }
  0x2a   :  { %p1737_p3 = scmp.lt.s32.totalorder %s1735_s25, %s1731_s1 }
  0x2c   :  { %p1738_p4 = por %p1737_p3, %p1736_p2 }
  0x2e   :  { %p1739_p5 = pnand %p1738_p4, %p1732_p1 }
  0x30   :  { %1742 = shalt.err (!%p1739_p5)
}
  0x31   :  { %74 = dma.hbm_to_vmem [thread:$0]  %s1974_s6, 16, %s72_s24, [#allocation8]  }
  0x32   :  { %1743 = dma.done.wait [#allocation3], 4096  }
  0x33   :  { %1744 = vsyncadd [#allocation3], 4294963200 }
  0x34   :  { %1745 = dma.done.wait [#allocation5], 8576  }
  0x35   :  { %1746 = vsyncadd [#allocation5], 4294958720 }
  0x36   :  { %1747 = dma.done.wait [#allocation8], 16  }
  0x37   :  { %1748 = vsyncadd [#allocation8], 4294967280  ;;  %v1759_v0 = vmov 0   ;;  %v1507_v1 = vld [vmem:[#allocation2 + $0xe4] ss:$16 sps:$4 sm:$0xff]   ;;  %vm832_vm0 = vcmask 1041408  }
  0x38   :  { %352 = vmatprep.mubr.bf16.mxu0 %v1759_v0  ;;  %393 = vmatprep.mubr.bf16.mxu1 %v1759_v0  ;;  %v1509_v2 = vld [vmem:[#allocation2 + $0xec] ss:$16 sps:$4 sm:$0xff]   ;;  %v1511_v3 = vld [vmem:[#allocation2 + $0xe0] ss:$16 sps:$4 sm:$0xff]   ;;  %v1512_v4 = vld [vmem:[#allocation2 + $0xe8] ss:$16 sps:$4 sm:$0xff]  }
  0x39   :  { %320 = vmatprep.subr.bf16.mxu0 %v1507_v1  ;;  %361 = vmatprep.subr.bf16.mxu1 %v1509_v2  ;;  %v1513_v5 = vld [vmem:[#allocation2 + $0xc4] ss:$16 sps:$4 sm:$0xff]   ;;  %v1515_v6 = vld [vmem:[#allocation2 + $0xcc] ss:$16 sps:$4 sm:$0xff]   ;;  %v1517_v7 = vld [vmem:[#allocation2 + $0xc0] ss:$16 sps:$4 sm:$0xff]  }
  0x3a   :  { %321 = vmatpush1.bf16.msra.mxu0 %v1511_v3  ;;  %362 = vmatpush1.bf16.msra.mxu1 %v1512_v4  ;;  %v1518_v8 = vld [vmem:[#allocation2 + $0xc8] ss:$16 sps:$4 sm:$0xff]   ;;  %v1519_v9 = vld [vmem:[#allocation2 + $0xa4] ss:$16 sps:$4 sm:$0xff]   ;;  %v1521_v10 = vld [vmem:[#allocation2 + $0xac] ss:$16 sps:$4 sm:$0xff]  }
  0x3b   :  { %322 = vmatprep.subr.bf16.mxu0 %v1513_v5  ;;  %363 = vmatprep.subr.bf16.mxu1 %v1515_v6  ;;  %v1523_v11 = vld [vmem:[#allocation2 + $0xa0] ss:$16 sps:$4 sm:$0xff]   ;;  %v1524_v12 = vld [vmem:[#allocation2 + $0xa8] ss:$16 sps:$4 sm:$0xff]   ;;  %v1525_v13 = vld [vmem:[#allocation2 + $0x84] ss:$16 sps:$4 sm:$0xff]  }
  0x3c   :  { %v1527_v14 = vld [vmem:[#allocation2 + $0x8c] ss:$16 sps:$4 sm:$0xff]   ;;  %v1529_v15 = vld [vmem:[#allocation2 + $0x80] ss:$16 sps:$4 sm:$0xff]   ;;  %v1530_v16 = vld [vmem:[#allocation2 + $0x88] ss:$16 sps:$4 sm:$0xff]  }
  0x3d   :  { %v1531_v17 = vld [vmem:[#allocation2 + $0x64] ss:$16 sps:$4 sm:$0xff]   ;;  %v1533_v18 = vld [vmem:[#allocation2 + $0x6c] ss:$16 sps:$4 sm:$0xff]   ;;  %v1535_v19 = vld [vmem:[#allocation2 + $0x60] ss:$16 sps:$4 sm:$0xff]  }
  0x3e   :  { %323 = vmatpush1.bf16.msra.mxu0 %v1517_v7  ;;  %364 = vmatpush1.bf16.msra.mxu1 %v1518_v8  ;;  %v1536_v20 = vld [vmem:[#allocation2 + $0x68] ss:$16 sps:$4 sm:$0xff]   ;;  %v1537_v21 = vld [vmem:[#allocation2 + $0x44] ss:$16 sps:$4 sm:$0xff]   ;;  %v1539_v22 = vld [vmem:[#allocation2 + $0x4c] ss:$16 sps:$4 sm:$0xff]  }
  0x3f   :  { %324 = vmatprep.subr.bf16.mxu0 %v1519_v9  ;;  %365 = vmatprep.subr.bf16.mxu1 %v1521_v10  ;;  %v1541_v23 = vld [vmem:[#allocation2 + $0x40] ss:$16 sps:$4 sm:$0xff]   ;;  %v1542_v24 = vld [vmem:[#allocation2 + $0x48] ss:$16 sps:$4 sm:$0xff]   ;;  %v1543_v25 = vld [vmem:[#allocation2 + $0x24] ss:$16 sps:$4 sm:$0xff]  }
  0x40   :  { %v1545_v26 = vld [vmem:[#allocation2 + $0x2c] ss:$16 sps:$4 sm:$0xff]   ;;  %v1547_v27 = vld [vmem:[#allocation2 + $0x20] ss:$16 sps:$4 sm:$0xff]   ;;  %v1548_v28 = vld [vmem:[#allocation2 + $0x28] ss:$16 sps:$4 sm:$0xff]  }
  0x41   :  { %v1549_v29 = vld [vmem:[#allocation2 + $0x4] ss:$16 sps:$4 sm:$0xff]   ;;  %v1551_v30 = vld [vmem:[#allocation2 + $0xc] ss:$16 sps:$4 sm:$0xff]   ;;  %v1553_v31 = vld [vmem:[#allocation2] ss:$16 sps:$4 sm:$0xff]  }
  0x42   :  { %325 = vmatpush1.bf16.msra.mxu0 %v1523_v11  ;;  %366 = vmatpush1.bf16.msra.mxu1 %v1524_v12  ;;  %v1554_v32 = vld [vmem:[#allocation2 + $0x8] ss:$16 sps:$4 sm:$0xff]   ;;  %v104_v33 = vld [vmem:[%s1968_s0] sm:$0xff]  ;;  %v1557_v36 = vld [vmem:[#allocation4 + $0x74] ss:$8 sps:$4 sm:$0xff]   ;;  %vm833_vm1 = vcmask 1042432  }
  0x43   :  { %326 = vmatprep.subr.bf16.mxu0 %v1525_v13  ;;  %367 = vmatprep.subr.bf16.mxu1 %v1527_v14  ;;  %v105_v34 = vpack.c.bf16 %v104_v33, %v104_v33  ;;  %v1555_v35 = vld [vmem:[#allocation4 + $0x70] ss:$8 sps:$4 sm:$0xff]   ;;  %v1560_v37 = vld [vmem:[#allocation4 + $0x64] ss:$8 sps:$4 sm:$0xff]   ;;  %v1558_v39 = vld [vmem:[#allocation4 + $0x60] ss:$8 sps:$4 sm:$0xff]  }
  0x44   :  { %v1567_v38 = vld [vmem:[#allocation4 + $0x170] ss:$8 sps:$4 sm:$0xff]   ;;  %v1569_v40 = vld [vmem:[#allocation4 + $0x174] ss:$8 sps:$4 sm:$0xff]   ;;  %v1575_v42 = vld [vmem:[#allocation4 + $0x164] ss:$8 sps:$4 sm:$0xff]  }
  0x45   :  { %v1563_v41 = vld [vmem:[#allocation4 + $0x54] ss:$8 sps:$4 sm:$0xff]   ;;  %v1573_v43 = vld [vmem:[#allocation4 + $0x160] ss:$8 sps:$4 sm:$0xff]   ;;  %v1561_v44 = vld [vmem:[#allocation4 + $0x50] ss:$8 sps:$4 sm:$0xff]  }
  0x46   :  { %327 = vmatpush1.bf16.msra.mxu0 %v1529_v15  ;;  %368 = vmatpush1.bf16.msra.mxu1 %v1530_v16  ;;  %v1581_v45 = vld [vmem:[#allocation4 + $0x154] ss:$8 sps:$4 sm:$0xff]   ;;  %v1566_v46 = vld [vmem:[#allocation4 + $0x44] ss:$8 sps:$4 sm:$0xff]   ;;  %v1579_v47 = vld [vmem:[#allocation4 + $0x150] ss:$8 sps:$4 sm:$0xff]  }
  0x47   :  { %328 = vmatprep.subr.bf16.mxu0 %v1531_v17  ;;  %369 = vmatprep.subr.bf16.mxu1 %v1533_v18  ;;  %v1564_v48 = vld [vmem:[#allocation4 + $0x40] ss:$8 sps:$4 sm:$0xff]   ;;  %v1587_v49 = vld [vmem:[#allocation4 + $0x144] ss:$8 sps:$4 sm:$0xff]   ;;  %v1572_v50 = vld [vmem:[#allocation4 + $0x34] ss:$8 sps:$4 sm:$0xff]  }
  0x48   :  { %v1585_v51 = vld [vmem:[#allocation4 + $0x140] ss:$8 sps:$4 sm:$0xff]   ;;  %v1570_v52 = vld [vmem:[#allocation4 + $0x30] ss:$8 sps:$4 sm:$0xff]   ;;  %v1593_v53 = vld [vmem:[#allocation4 + $0x134] ss:$8 sps:$4 sm:$0xff]  }
  0x49   :  { %v1578_v54 = vld [vmem:[#allocation4 + $0x24] ss:$8 sps:$4 sm:$0xff]   ;;  %v1591_v55 = vld [vmem:[#allocation4 + $0x130] ss:$8 sps:$4 sm:$0xff]   ;;  %v1576_v56 = vld [vmem:[#allocation4 + $0x20] ss:$8 sps:$4 sm:$0xff]  }
  0x4a   :  { %329 = vmatpush1.bf16.msra.mxu0 %v1535_v19  ;;  %370 = vmatpush1.bf16.msra.mxu1 %v1536_v20  ;;  %v1599_v57 = vld [vmem:[#allocation4 + $0x124] ss:$8 sps:$4 sm:$0xff]   ;;  %v1584_v58 = vld [vmem:[#allocation4 + $0x14] ss:$8 sps:$4 sm:$0xff]   ;;  %v1597_v59 = vld [vmem:[#allocation4 + $0x120] ss:$8 sps:$4 sm:$0xff]   ;;  %v140_v20 = vlaneseq }
  0x4b   :  { %330 = vmatprep.subr.bf16.mxu0 %v1537_v21  ;;  %371 = vmatprep.subr.bf16.mxu1 %v1539_v22  ;;  %v1582_v60 = vld [vmem:[#allocation4 + $0x10] ss:$8 sps:$4 sm:$0xff]   ;;  %v1605_v61 = vld [vmem:[#allocation4 + $0x114] ss:$8 sps:$4 sm:$0xff]   ;;  %v1590_v62 = vld [vmem:[#allocation4 + $0x4] ss:$8 sps:$4 sm:$0xff]  }
  0x4c   :  { %v530_v63 = vld [vmem:[#allocation4 + $0x1c0] sm:$0x77]  ;;  %v1760_v1 = vmov 65535   ;;  %v1603_v3 = vld [vmem:[#allocation4 + $0x110] ss:$8 sps:$4 sm:$0xff]   ;;  %v1864_v21 = vshrl.u32 %v140_v20, 7 }
  0x4d   :  { %v834_v2 = vsel %vm832_vm0, 4294967295, %v1760_v1  ;;  %v1588_v4 = vld [vmem:[#allocation4] ss:$8 sps:$4 sm:$0xff]   ;;  %v1611_v5 = vld [vmem:[#allocation4 + $0x104] ss:$8 sps:$4 sm:$0xff]   ;;  %v1402_v6 = vcombine.high %v530_v63, %v530_v63  ;;  %v1401_v10 = vcombine.low %v530_v63, %v530_v63  ;;  %s1762_s29 = smov 127  }
  0x4e   :  { %331 = vmatpush1.bf16.msra.mxu0 %v1541_v23  ;;  %372 = vmatpush1.bf16.msra.mxu1 %v1542_v24  ;;  %v1596_v7 = vld [vmem:[#allocation4 + $0xf4] ss:$8 sps:$4 sm:$0xff]   ;;  %v835_v8 = vsel %vm833_vm1, %v834_v2, 0  ;;  %v1609_v9 = vld [vmem:[#allocation4 + $0x100] ss:$8 sps:$4 sm:$0xff]   ;;  %v150_v22 = vsub.s32 2, %v1864_v21 }
  0x4f   :  { %332 = vmatprep.subr.bf16.mxu0 %v1543_v25  ;;  %373 = vmatprep.subr.bf16.mxu1 %v1545_v26  ;;  %v1594_v11 = vld [vmem:[#allocation4 + $0xf0] ss:$8 sps:$4 sm:$0xff]   ;;  %v840_v12 = vand.u32 %v1402_v6, %v835_v8  ;;  %v1602_v13 = vld [vmem:[#allocation4 + $0xe4] ss:$8 sps:$4 sm:$0xff]   ;;  %v837_v14 = vand.u32 %v1401_v10, %v835_v8  ;;  %v1600_v15 = vld [vmem:[#allocation4 + $0xe0] ss:$8 sps:$4 sm:$0xff]  }
  0x50   :  { %v1608_v16 = vld [vmem:[#allocation4 + $0xd4] ss:$8 sps:$4 sm:$0xff]   ;;  %v1606_v17 = vld [vmem:[#allocation4 + $0xd0] ss:$8 sps:$4 sm:$0xff]   ;;  %v1614_v18 = vld [vmem:[#allocation4 + $0xc4] ss:$8 sps:$4 sm:$0xff]  }
  0x51   :  { %v1612_v19 = vld [vmem:[#allocation4 + $0xc0] ss:$8 sps:$4 sm:$0xff]   ;;  %v146_v23 = vsub.s32 1, %v1864_v21  ;;  %v1619_v24 = vld [vmem:[#allocation4 + $0xb4] ss:$8 sps:$4 sm:$0xff]   ;;  %s1763_s30 = smov 125  }
  0x52   :  { %333 = vmatpush1.bf16.msra.mxu0 %v1547_v27  ;;  %374 = vmatpush1.bf16.msra.mxu1 %v1548_v28  ;;  %v138_v25 = vld [vmem:[%s1970_s2] sm:$0xf]  ;;  %v1617_v26 = vld [vmem:[#allocation4 + $0xb0] ss:$8 sps:$4 sm:$0xff]   ;;  %v1622_v27 = vld [vmem:[#allocation4 + $0x1b4] ss:$8 sps:$4 sm:$0xff]  }
  0x53   :  { %334 = vmatprep.subr.bf16.mxu0 %v1549_v29  ;;  %375 = vmatprep.subr.bf16.mxu1 %v1551_v30  ;;  %v151_v28 = vrot.slane %v138_v25, %v150_v22  ;;  %v154_v29 = vsub.s32 3, %v1864_v21  ;;  %v1620_v30 = vld [vmem:[#allocation4 + $0x1b0] ss:$8 sps:$4 sm:$0xff]   ;;  %v1625_v33 = vld [vmem:[#allocation4 + $0xa4] ss:$8 sps:$4 sm:$0xff]   ;;  %s1761_s2 = smov 126  }
  0x54   :  { %vm414_vm2 = vcmask 1039360   ;;  %vm434_vm3 = vcmask 1031168   ;;  %vm454_vm4 = vcmask 1022976   ;;  %vm828_vm5 = vcmask 564224  }
  0x55   :  { %vm1047_vm6 = vcmask 1045504   ;;  %vm1048_vm7 = vcmask 1046528   ;;  %vm1043_vm8 = vcmask 236544   ;;  %vm1096_vm9 = vcmask 195584  }
  0x56   :  { %335 = vmatpush1.bf16.msra.mxu0 %v1553_v31  ;;  %376 = vmatpush1.bf16.msra.mxu1 %v1554_v32  ;;  %v142_v31 = vsub.s32 0, %v1864_v21  ;;  %v147_v32 = vrot.slane %v138_v25, %v146_v23  ;;  %vm1157_vm10 = vcmask 1043456   ;;  %vm1765_vm11 = vmmov 0  }
  0x57   :  { %842 = vmatprep.subr.bf16.mxu0 %v1557_v36  ;;  %883 = vmatprep.subr.bf16.mxu1 %v1569_v40  ;;  %v1623_v36 = vld [vmem:[#allocation4 + $0xa0] ss:$8 sps:$4 sm:$0xff]  }
  0x58   :  { %v1626_v40 = vld [vmem:[#allocation4 + $0x1a0] ss:$8 sps:$4 sm:$0xff]  }
  0x59   :  { %353 = vmatmul.mubr.bf16.vlgmr.msra.gmra.mxu0 %v105_v34  ;;  %394 = vmatmul.mubr.bf16.vlgmr.msra.gmra.mxu1 %v105_v34 }
  0x5a   :  { %843 = vmatpush1.bf16.msra.mxu0 %v1555_v35  ;;  %884 = vmatpush1.bf16.msra.mxu1 %v1567_v38 }
  0x5b   :  { %844 = vmatprep.subr.bf16.mxu0 %v1560_v37  ;;  %885 = vmatprep.subr.bf16.mxu1 %v1575_v42  ;;  %v1628_v37 = vld [vmem:[#allocation4 + $0x1a4] ss:$8 sps:$4 sm:$0xff]  }
  0x5e   :  { %845 = vmatpush1.bf16.msra.mxu0 %v1558_v39  ;;  %886 = vmatpush1.bf16.msra.mxu1 %v1573_v43  ;;  %v155_v39 = vrot.slane %v138_v25, %v154_v29  ;;  %v143_v43 = vrot.slane %v138_v25, %v142_v31 }
  0x5f   :  { %846 = vmatprep.subr.bf16.mxu0 %v1563_v41  ;;  %887 = vmatprep.subr.bf16.mxu1 %v1581_v45  ;;  %v1629_v45 = vld [vmem:[#allocation4 + $0x90] ss:$8 sps:$4 sm:$0xff]  }
  0x62   :  { %847 = vmatpush1.bf16.msra.mxu0 %v1561_v44  ;;  %888 = vmatpush1.bf16.msra.mxu1 %v1579_v47 }
  0x63   :  { %848 = vmatprep.subr.bf16.mxu0 %v1566_v46  ;;  %889 = vmatprep.subr.bf16.mxu1 %v1587_v49  ;;  %v1631_v46 = vld [vmem:[#allocation4 + $0x94] ss:$8 sps:$4 sm:$0xff]   ;;  %v1632_v49 = vld [vmem:[#allocation4 + $0x190] ss:$8 sps:$4 sm:$0xff]  }
  0x66   :  { %849 = vmatpush1.bf16.msra.mxu0 %v1564_v48  ;;  %890 = vmatpush1.bf16.msra.mxu1 %v1585_v51 }
  0x67   :  { %850 = vmatprep.subr.bf16.mxu0 %v1572_v50  ;;  %891 = vmatprep.subr.bf16.mxu1 %v1593_v53  ;;  %v1634_v50 = vld [vmem:[#allocation4 + $0x194] ss:$8 sps:$4 sm:$0xff]  }
  0x6a   :  { %851 = vmatpush1.bf16.msra.mxu0 %v1570_v52  ;;  %892 = vmatpush1.bf16.msra.mxu1 %v1591_v55 }
  0x6b   :  { %852 = vmatprep.subr.bf16.mxu0 %v1578_v54  ;;  %893 = vmatprep.subr.bf16.mxu1 %v1599_v57  ;;  %v1635_v57 = vld [vmem:[#allocation4 + $0x80] ss:$8 sps:$4 sm:$0xff]  }
  0x6e   :  { %853 = vmatpush1.bf16.msra.mxu0 %v1576_v56  ;;  %894 = vmatpush1.bf16.msra.mxu1 %v1597_v59  ;;  %v1637_v56 = vld [vmem:[#allocation4 + $0x84] ss:$8 sps:$4 sm:$0xff]  }
  0x6f   :  { %854 = vmatprep.subr.bf16.mxu0 %v1584_v58  ;;  %895 = vmatprep.subr.bf16.mxu1 %v1605_v61  ;;  %v1640_v58 = vld [vmem:[#allocation4 + $0x184] ss:$8 sps:$4 sm:$0xff]  }
  0x72   :  { %855 = vmatpush1.bf16.msra.mxu0 %v1582_v60  ;;  %896 = vmatpush1.bf16.msra.mxu1 %v1603_v3  ;;  %v1638_v60 = vld [vmem:[#allocation4 + $0x180] ss:$8 sps:$4 sm:$0xff]  }
  0x73   :  { %856 = vmatprep.subr.bf16.mxu0 %v1590_v62  ;;  %897 = vmatprep.subr.bf16.mxu1 %v1611_v5 }
  0x76   :  { %857 = vmatpush1.bf16.msra.mxu0 %v1588_v4  ;;  %898 = vmatpush1.bf16.msra.mxu1 %v1609_v9 }
  0x77   :  { %858 = vmatprep.subr.bf16.mxu0 %v1596_v7  ;;  %905 = vmatprep.subr.bf16.mxu1 %v840_v12 }
  0x7a   :  { %859 = vmatpush2.bf16.msra.mxu0 %v1594_v11  ;;  %906 = vmatpush2.bf16.msra.mxu1 %v837_v14 }
  0x7b   :  { %860 = vmatprep.subr.bf16.mxu0 %v1602_v13  ;;  %907 = vmatprep.subr.bf16.mxu1 %v1622_v27 }
  0x7e   :  { %861 = vmatpush2.bf16.msra.mxu0 %v1600_v15  ;;  %908 = vmatpush2.bf16.msra.mxu1 %v1620_v30 }
  0x7f   :  { %862 = vmatprep.subr.bf16.mxu0 %v1608_v16  ;;  %909 = vmatprep.subr.bf16.mxu1 %v1628_v37 }
  0x82   :  { %863 = vmatpush2.bf16.msra.mxu0 %v1606_v17  ;;  %910 = vmatpush2.bf16.msra.mxu1 %v1626_v40 }
  0x83   :  { %864 = vmatprep.subr.bf16.mxu0 %v1614_v18  ;;  %911 = vmatprep.subr.bf16.mxu1 %v1634_v50  ;;  %v1643_v50 = vld [vmem:[#allocation6 + $0x28] sm:$0xff]  }
  0x86   :  { %865 = vmatpush2.bf16.msra.mxu0 %v1612_v19  ;;  %912 = vmatpush2.bf16.msra.mxu1 %v1632_v49  ;;  %v1642_v49 = vld [vmem:[#allocation6 + $0x30] sm:$0xff]  }
  0x87   :  { %866 = vmatprep.subr.bf16.mxu0 %v1619_v24  ;;  %913 = vmatprep.subr.bf16.mxu1 %v1640_v58  ;;  %v1648_v58 = vld [vmem:[#allocation6] sm:$0xff]  }
  0x8a   :  { %867 = vmatpush2.bf16.msra.mxu0 %v1617_v26  ;;  %914 = vmatpush2.bf16.msra.mxu1 %v1638_v60  ;;  %v1649_v60 = vld [vmem:[#allocation6 + $0x48] sm:$0x7f]  }
  0x8b   :  { %868 = vmatprep.subr.bf16.mxu0 %v1625_v33  ;;  %1054 = vmatprep.subr.bf16.mxu1 %v1759_v0 }
  0x8e   :  { %869 = vmatpush2.bf16.msra.mxu0 %v1623_v36 }
  0x8f   :  { %870 = vmatprep.subr.bf16.mxu0 %v1631_v46 }
  0x92   :  { %871 = vmatpush2.bf16.msra.mxu0 %v1629_v45 }
  0x93   :  { %872 = vmatprep.subr.bf16.mxu0 %v1637_v56  ;;  %v1049_v56 = vsel %vm1047_vm6, 4294967295, %v1760_v1 }
  0x96   :  { %873 = vmatpush2.bf16.msra.mxu0 %v1635_v57 }
 0x119   :  { %v354_v34 = vpop.f32.mrf.mxu0  ;;  %v395_v35 = vpop.f32.mrf.mxu1 }
 0x11a   :  { %v1875_v38 = vadd.f32 %v395_v35, %v151_v28  ;;  %v355_v55 = vadd.f32 %v354_v34, %v143_v43 }
 0x11b   :  { %v356_v41 = vpop.f32.mrf.mxu0  ;;  %v397_v42 = vpop.f32.mrf.mxu1 }
 0x11c   :  { %v1879_v44 = vadd.f32 %v356_v41, %v147_v32  ;;  %v398_v51 = vadd.f32 %v397_v42, %v155_v39 }
 0x11d   :  { %v358_v47 = vpop.f32.mrf.mxu0  ;;  %v399_v48 = vpop.f32.mrf.mxu1 }
 0x11e   :  { %v1477_v52 = vpack.i.bf16 %v1875_v38, %v1879_v44  ;;  %v1482_v59 = vpack.i.bf16 %v398_v51, %v355_v55  ;;  %v1641_v48 = vld [vmem:[#allocation6 + $0x38] sm:$0xff]  }
 0x11f   :  { %v359_v53 = vpop.f32.mrf.mxu0  ;;  %v400_v54 = vpop.f32.mrf.mxu1 }
 0x120   :  { %1478 = vrot.lane.b32.xlu1 %v1477_v52, %s1761_s2  ;;  %1468 = vrot.lane.b32.xlu0 %v1477_v52, %s1762_s29  ;;  %v1646_v53 = vld [vmem:[#allocation6 + $0x10] sm:$0xff]   ;;  %v1647_v54 = vld [vmem:[#allocation6 + $0x8] sm:$0xff]  }
 0x124   :  { %1483 = vrot.lane.b32.xlu1 %v1482_v59, %s1761_s2  ;;  %1473 = vrot.lane.b32.xlu0 %v1482_v59, %s1762_s29 }
 0x128   :  { %446 = vrot.lane.b32.xlu1 %v355_v55, %s1763_s30  ;;  %1488 = vrot.lane.b32.xlu0 %v1477_v52, %s1763_s30  ;;  %v1645_v52 = vld [vmem:[#allocation6 + $0x18] sm:$0xff]  }
 0x12c   :  { %452 = vrot.lane.b32.xlu0 %v398_v51, %s1763_s30 }
 0x192   :  { %v1479_v61 = vpop.permute.xlu1 %1478  ;;  %v1469_v62 = vpop.permute.xlu0 %1468 }
 0x193   :  { %v1471_v63 = vunpack.i.h.bf16 %v1469_v62  ;;  %v1470_v2 = vunpack.i.l.bf16 %v1469_v62  ;;  %v1481_v4 = vunpack.i.h.bf16 %v1479_v61  ;;  %v1480_v7 = vunpack.i.l.bf16 %v1479_v61 }
 0x194   :  { %v1050_v62 = vsel %vm1048_vm7, %v1049_v56, 0 }
 0x195   :  { %v416_v3 = vsel %vm414_vm2, %v1470_v2, %v1471_v63  ;;  %v436_v19 = vsel %vm434_vm3, %v1480_v7, %v1481_v4 }
 0x196   :  { %v1484_v5 = vpop.permute.xlu1 %1483  ;;  %v1474_v6 = vpop.permute.xlu0 %1473  ;;  %v423_v11 = vmax.f32 %v1879_v44, %v416_v3  ;;  %v1052_v3 = vand.u32 %v1649_v60, %v1050_v62  ;;  %v1416_v60 = vld [vmem:[%s1975_s7] ss:$0 sm:$0xff] }
 0x197   :  { %v1485_v8 = vunpack.i.l.bf16 %v1484_v5  ;;  %v1476_v9 = vunpack.i.h.bf16 %v1474_v6  ;;  %v1475_v10 = vunpack.i.l.bf16 %v1474_v6  ;;  %v1486_v12 = vunpack.i.h.bf16 %v1484_v5  ;;  %v1417_v62 = vld [vmem:[%s1976_s8] ss:$0 sm:$0xff] }
 0x198   :  { %v443_v27 = vmax.f32 %v423_v11, %v436_v19 }
 0x199   :  { %v417_v13 = vsel %vm414_vm2, %v1471_v63, %v1476_v9  ;;  %v425_v14 = vmax.f32 %v398_v51, %v1476_v9  ;;  %v415_v15 = vsel %vm414_vm2, %v1475_v10, %v1470_v2  ;;  %v435_v20 = vsel %vm434_vm3, %v1485_v8, %v1480_v7  ;;  %v1644_v51 = vld [vmem:[#allocation6 + $0x20] sm:$0xff]  }
 0x19a   :  { %v422_v16 = vmax.f32 %v355_v55, %v415_v15  ;;  %v1489_v17 = vpop.permute.xlu0 %1488  ;;  %v424_v18 = vmax.f32 %v1875_v38, %v417_v13  ;;  %v447_v26 = vpop.permute.xlu1 %446  ;;  %v437_v28 = vsel %vm434_vm3, %v1481_v4, %v1486_v12  ;;  %v531_v55 = vld [vmem:[%s1972_s4] sm:$0x3]  ;;  %v1650_v7 = vld [vmem:[#allocation6 + $0x40] sm:$0xff]  }
 0x19b   :  { %v1491_v22 = vunpack.i.h.bf16 %v1489_v17  ;;  %v1490_v24 = vunpack.i.l.bf16 %v1489_v17  ;;  %v445_v29 = vmax.f32 %v425_v14, %v1486_v12  ;;  %v536_v57 = vrot.slane %v531_v55, %v142_v31 }
 0x19c   :  { %v442_v25 = vmax.f32 %v422_v16, %v435_v20  ;;  %v444_v34 = vmax.f32 %v424_v18, %v437_v28  ;;  %v540_v59 = vrot.slane %v531_v55, %v146_v23 }
 0x19d   :  { %v456_v30 = vsel %vm454_vm4, %v1490_v24, %v1491_v22  ;;  %v455_v32 = vsel %vm454_vm4, %v447_v26, %v1490_v24 }
 0x19e   :  { %v453_v33 = vpop.permute.xlu0 %452  ;;  %v463_v35 = vmax.f32 %v443_v27, %v456_v30  ;;  %v462_v36 = vmax.f32 %v442_v25, %v455_v32 }
 0x19f   :  { %v457_v37 = vsel %vm454_vm4, %v1491_v22, %v453_v33  ;;  %v465_v38 = vmax.f32 %v445_v29, %v453_v33 }
 0x1a0   :  { %v464_v39 = vmax.f32 %v444_v34, %v457_v37  ;;  %v467_v40 = vmax.f32 %v463_v35, 0.0  ;;  %v466_v41 = vmax.f32 %v462_v36, 0.0  ;;  %v1404_v35 = vld [vmem:[#allocation7] ss:$0 sm:$0xff] }
 0x1a1   :  { %v469_v42 = vmax.f32 %v465_v38, 0.0 }
 0x1a2   :  { %v468_v43 = vmax.f32 %v464_v39, 0.0  ;;  %v471_v44 = vpack.c.bf16 %v467_v40, %v467_v40  ;;  %v470_v45 = vpack.c.bf16 %v466_v41, %v466_v41 }
 0x1a3   :  { %v473_v46 = vpack.c.bf16 %v469_v42, %v469_v42 }
 0x1a4   :  { %v472_v47 = vpack.c.bf16 %v468_v43, %v468_v43  ;;  %874 = vmatprep.mubr.bf16.mxu0 %v471_v44 }
 0x1a5   :  { %875 = vmatmul.mubr.bf16.vlgmr.msra.gmra.mxu0 %v470_v45  ;;  %1403 = vmatprep.mubr.msk.bf16.mxu1 %vm828_vm5, %v473_v46 }
 0x1a6   :  { %916 = vmatmul.mubr.bf16.vlgmr.msra.gmra.mxu1 %v472_v47  ;;  %v1651_v47 = vld [vmem:[%s1977_s9 + $0x8] ss:$0 sps:$4 sm:$0xff]  }
 0x1a7   :  { %1055 = vmatpush1.bf16.msra.mxu1 %v1641_v48  ;;  %v1764_v48 = vmov 0.0  }
 0x1a8   :  { %1056 = vmatprep.subr.bf16.mxu1 %v1759_v0  ;;  %1434 = vmatprep.subr.bf16.mxu0 %v1764_v48 }
 0x1a9   :  { %1438 = vmatprep.mubr.msk.bf16.mxu0 %vm1765_vm11, %v1764_v48 }
 0x1ab   :  { %1057 = vmatpush1.bf16.msra.mxu1 %v1642_v49  ;;  %v1159_v49 = vsel %vm1157_vm10, %v1651_v47, 0 }
 0x1ac   :  { %1058 = vmatprep.subr.bf16.mxu1 %v1759_v0  ;;  %1435 = vmatpush3.bf16.msra.mxu0 %v1159_v49 }
 0x1ad   :  { %1436 = vmatprep.subr.bf16.mxu0 %v1764_v48 }
 0x1af   :  { %1059 = vmatpush1.bf16.msra.mxu1 %v1643_v50  ;;  %v1652_v50 = vld [vmem:[%s1977_s9] sm:$0xff]  }
 0x1b0   :  { %1060 = vmatprep.subr.bf16.mxu1 %v1759_v0  ;;  %1437 = vmatpush3.bf16.msra.mxu0 %v1652_v50 }
 0x1b1   :  { %1442 = vmatprep.subr.bf16.mxu0 %v1764_v48 }
 0x1b3   :  { %1061 = vmatpush1.bf16.msra.mxu1 %v1644_v51 }
 0x1b4   :  { %1062 = vmatprep.subr.bf16.mxu1 %v1759_v0 }
 0x1b7   :  { %1063 = vmatpush1.bf16.msra.mxu1 %v1645_v52 }
 0x1b8   :  { %1064 = vmatprep.subr.bf16.mxu1 %v1759_v0 }
 0x1bb   :  { %1065 = vmatpush1.bf16.msra.mxu1 %v1646_v53 }
 0x1bc   :  { %1066 = vmatprep.subr.bf16.mxu1 %v1759_v0 }
 0x1bf   :  { %1067 = vmatpush1.bf16.msra.mxu1 %v1647_v54 }
 0x1c0   :  { %1068 = vmatprep.subr.bf16.mxu1 %v1759_v0 }
 0x1c3   :  { %1069 = vmatpush1.bf16.msra.mxu1 %v1648_v58 }
 0x1c4   :  { %1082 = vmatprep.subr.bf16.mxu1 %v1759_v0 }
 0x1c7   :  { %1083 = vmatpush2.bf16.msra.mxu1 %v1052_v3 }
 0x1c8   :  { %1084 = vmatprep.subr.bf16.mxu1 %v1759_v0 }
 0x1cb   :  { %1085 = vmatpush2.bf16.msra.mxu1 %v1650_v7 }
 0x265   :  { %v876_v61 = vpop.f32.mrf.mxu0 }
 0x266   :  { %v877_v63 = vadd.f32 %v876_v61, %v536_v57  ;;  %v917_v2 = vpop.f32.mrf.mxu1 }
 0x267   :  { %v878_v4 = vpop.f32.mrf.mxu0 }
 0x268   :  { %v879_v5 = vadd.f32 %v878_v4, %v540_v59  ;;  %v919_v1 = vpop.f32.mrf.mxu1  ;;  %v918_v31 = vadd.f32 %v917_v2, %v877_v63 }
 0x269   :  { %v880_v6 = vpop.f32.mrf.mxu0 }
 0x26a   :  { %v920_v21 = vadd.f32 %v919_v1, %v879_v5  ;;  %v921_v23 = vpop.f32.mrf.mxu1  ;;  %v1418_v1 = vld [vmem:[%s1978_s10] ss:$0 sm:$0xff] }
 0x26b   :  { %v881_v8 = vpop.f32.mrf.mxu0 }
 0x26c   :  { %v922_v9 = vpop.f32.mrf.mxu1  ;;  %v1497_v10 = vpack.i.bf16 %v920_v21, %v918_v31 }
 0x26e   :  { %1498 = vrot.lane.b32.xlu0 %v1497_v10, %s1761_s2  ;;  %1493 = vrot.lane.b32.xlu1 %v1497_v10, %s1762_s29 }
 0x272   :  { %1503 = vrot.lane.b32.xlu1 %v1497_v10, %s1763_s30 }
 0x2e0   :  { %v1499_v11 = vpop.permute.xlu0 %1498  ;;  %v1494_v12 = vpop.permute.xlu1 %1493 }
 0x2e1   :  { %v1501_v13 = vunpack.i.h.bf16 %v1499_v11  ;;  %v1500_v14 = vunpack.i.l.bf16 %v1499_v11  ;;  %v1496_v15 = vunpack.i.h.bf16 %v1494_v12  ;;  %v1495_v0 = vunpack.i.l.bf16 %v1494_v12 }
 0x2e3   :  { %v934_v16 = vmax.f32 %v920_v21, %v1496_v15  ;;  %v930_v17 = vsel %vm414_vm2, %v1495_v0, %v1496_v15  ;;  %v939_v20 = vsel %vm434_vm3, %v1500_v14, %v1501_v13  ;;  %v1653_v14 = vld [vmem:[%s1981_s13 + $0x8] ss:$0 sps:$4 sm:$0xff]   ;;  %v1654_v0 = vld [vmem:[%s1981_s13] sm:$0xff]  }
 0x2e4   :  { %v933_v18 = vmax.f32 %v918_v31, %v930_v17  ;;  %v1504_v19 = vpop.permute.xlu1 %1503  ;;  %v1263_v15 = vsel %vm1157_vm10, %v1653_v14, 0 }
 0x2e5   :  { %v1506_v22 = vunpack.i.h.bf16 %v1504_v19  ;;  %v1505_v24 = vunpack.i.l.bf16 %v1504_v19  ;;  %v943_v25 = vmax.f32 %v934_v16, %v1501_v13 }
 0x2e6   :  { %v942_v26 = vmax.f32 %v933_v18, %v939_v20 }
 0x2e7   :  { %v948_v27 = vsel %vm454_vm4, %v1505_v24, %v1506_v22  ;;  %v952_v28 = vmax.f32 %v943_v25, %v1506_v22 }
 0x2e8   :  { %v951_v29 = vmax.f32 %v942_v26, %v948_v27  ;;  %v1422_v27 = vld [vmem:[%s1979_s11] ss:$0 sm:$0xff] }
 0x2e9   :  { %v954_v30 = vmax.f32 %v952_v28, 0.0 }
 0x2ea   :  { %v953_v32 = vmax.f32 %v951_v29, 0.0  ;;  %v1423_v29 = vld [vmem:[%s1980_s12] ss:$0 sm:$0xff] }
 0x2eb   :  { %v956_v33 = vpack.c.bf16 %v954_v30, %v954_v30 }
 0x2ec   :  { %v955_v34 = vpack.c.bf16 %v953_v32, %v953_v32 }
 0x2ed   :  { %1415 = vmatprep.mubr.msk.bf16.mxu1 %vm1043_vm8, %v956_v33 }
 0x2ee   :  { %1087 = vmatmul.mubr.bf16.vlgmr.msra.gmra.mxu1 %v955_v34 }
 0x3ae   :  { %v1088_v36 = vpop.f32.mrf.mxu1 }
 0x3af   :  { %v1089_v37 = vadd.f32 %v1404_v35, %v1088_v36  ;;  %v1424_v36 = vld [vmem:[%s1982_s14] ss:$0 sm:$0xff] }
 0x3b0   :  { %v1090_v38 = vpop.f32.mrf.mxu1 }
 0x3b1   :  { %v1097_v39 = vsel %vm1096_vm9, %v1089_v37, 0.0 }
 0x3b2   :  { %v1091_v40 = vpop.f32.mrf.mxu1  ;;  %1098 = vadd.xlane.f32.xlu0 %v1097_v39 }
 0x3b4   :  { %v1092_v41 = vpop.f32.mrf.mxu1 }
 0x43b   :  { %v1099_v42 = vpop.xlane.xlu0 %1098 }
 0x43c   :  { %v1101_v43 = vmul.f32 0.041666668, %v1099_v42 }
 0x43e   :  { %v1102_v44 = vsub.f32 %v1089_v37, %v1101_v43 }
 0x440   :  { %v1103_v45 = vmul.f32 %v1102_v44, %v1102_v44 }
 0x442   :  { %v1104_v46 = vsel %vm1096_vm9, %v1103_v45, 0.0 }
 0x443   :  { %1105 = vadd.xlane.f32.xlu1 %v1104_v46 }
 0x4cc   :  { %v1106_v51 = vpop.xlane.xlu1 %1105 }
 0x4cd   :  { %v1107_v52 = vmul.f32 0.04347826, %v1106_v51 }
 0x4cf   :  { %1655 = vrsqrt.f32 %v1107_v52  ;;  %vm1110_vm12 = vcmp.eq.f32.partialorder %v1107_v52, inf  ;;  %v1113_v55 = vand.u32 2147483648, %v1107_v52  ;;  %vm1112_vm13 = vcmp.eq.f32.partialorder %v1107_v52, 0.0 }
 0x4dc   :  { %v1656_v53 = vpop.eup %1655 }
 0x4dd   :  { %v1109_v54 = vmul.f32 %v1656_v53, %v1107_v52 }
 0x4df   :  { %v1111_v56 = vsel %vm1110_vm12, %v1107_v52, %v1109_v54 }
 0x4e0   :  { %v1114_v57 = vsel %vm1112_vm13, %v1113_v55, %v1111_v56 }
 0x4e1   :  { %v1115_v58 = vadd.f32 1e-06, %v1114_v57 }
 0x4e3   :  { %1657 = vrcp.f32 %v1115_v58 }
 0x4f0   :  { %v1658_v59 = vpop.eup %1657 }
 0x4f1   :  { %v1117_v61 = vmul.f32 %v1658_v59, %v1102_v44 }
 0x4f3   :  { %v1124_v63 = vmul.f32 %v1416_v60, %v1117_v61 }
 0x4f5   :  { %v1131_v2 = vadd.f32 %v1417_v62, %v1124_v63 }
 0x4f7   :  { %v1132_v3 = vadd.f32 %v1131_v2, %v1089_v37 }
 0x4f9   :  { %v1133_v4 = vmax.f32 %v1132_v3, 0.0 }
 0x4fb   :  { %v1134_v5 = vpack.c.bf16 %v1133_v4, %v1133_v4 }
 0x4fd   :  { %1439 = vmatmul.mubr.msk.bf16.vlgmr.msra.gmra.mxu0 %vm1096_vm9, %v1134_v5 }
 0x4fe   :  { %1446 = vmatprep.mubr.msk.bf16.mxu0 %vm1765_vm11, %v1764_v48  ;;  %1443 = vmatpush3.bf16.msra.mxu0 %v1263_v15 }
 0x4ff   :  { %1444 = vmatprep.subr.bf16.mxu0 %v1764_v48 }
 0x502   :  { %1445 = vmatpush3.bf16.msra.mxu0 %v1654_v0 }
 0x5bd   :  { %v1195_v6 = vpop.f32.mrf.mxu0 }
 0x5be   :  { %v1196_v31 = vadd.f32 %v1418_v1, %v1195_v6 }
 0x5bf   :  { %v1440_v21 = vpop.f32.mrf.mxu0 }
 0x5c0   :  { %v1203_v23 = vsel %vm1096_vm9, %v1196_v31, 0.0 }
 0x5c1   :  { %1204 = vadd.xlane.f32.xlu0 %v1203_v23  ;;  %v1198_v7 = vpop.f32.mrf.mxu0 }
 0x5c3   :  { %v1441_v8 = vpop.f32.mrf.mxu0 }
 0x64a   :  { %v1205_v9 = vpop.xlane.xlu0 %1204 }
 0x64b   :  { %v1206_v10 = vmul.f32 0.041666668, %v1205_v9 }
 0x64d   :  { %v1207_v11 = vsub.f32 %v1196_v31, %v1206_v10 }
 0x64f   :  { %v1208_v12 = vmul.f32 %v1207_v11, %v1207_v11 }
 0x651   :  { %v1209_v13 = vsel %vm1096_vm9, %v1208_v12, 0.0 }
 0x652   :  { %1210 = vadd.xlane.f32.xlu0 %v1209_v13 }
 0x6db   :  { %v1211_v16 = vpop.xlane.xlu0 %1210 }
 0x6dc   :  { %v1212_v17 = vmul.f32 0.04347826, %v1211_v16 }
 0x6de   :  { %1659 = vrsqrt.f32 %v1212_v17  ;;  %vm1215_vm14 = vcmp.eq.f32.partialorder %v1212_v17, inf  ;;  %v1218_v20 = vand.u32 2147483648, %v1212_v17  ;;  %vm1217_vm15 = vcmp.eq.f32.partialorder %v1212_v17, 0.0 }
 0x6eb   :  { %v1660_v18 = vpop.eup %1659 }
 0x6ec   :  { %v1214_v19 = vmul.f32 %v1660_v18, %v1212_v17 }
 0x6ee   :  { %v1216_v22 = vsel %vm1215_vm14, %v1212_v17, %v1214_v19 }
 0x6ef   :  { %v1219_v24 = vsel %vm1217_vm15, %v1218_v20, %v1216_v22 }
 0x6f0   :  { %v1220_v25 = vadd.f32 1e-06, %v1219_v24 }
 0x6f2   :  { %1661 = vrcp.f32 %v1220_v25 }
 0x6ff   :  { %v1662_v26 = vpop.eup %1661 }
 0x700   :  { %v1222_v28 = vmul.f32 %v1662_v26, %v1207_v11 }
 0x702   :  { %v1229_v30 = vmul.f32 %v1422_v27, %v1222_v28 }
 0x704   :  { %v1236_v32 = vadd.f32 %v1423_v29, %v1229_v30 }
 0x706   :  { %v1237_v33 = vadd.f32 %v1236_v32, %v1196_v31 }
 0x708   :  { %v1238_v34 = vmax.f32 %v1237_v33, 0.0 }
 0x70a   :  { %v1239_v35 = vpack.c.bf16 %v1238_v34, %v1238_v34 }
 0x70c   :  { %1447 = vmatmul.mubr.msk.bf16.vlgmr.msra.gmra.mxu0 %vm1096_vm9, %v1239_v35 }
 0x7cc   :  { %v1299_v37 = vpop.f32.mrf.mxu0 }
 0x7cd   :  { %v1300_v38 = vadd.f32 %v1424_v36, %v1299_v37 }
 0x7ce   :  { %v1448_v39 = vpop.f32.mrf.mxu0 }
 0x7cf   :  { %1305 = vst [vmem:[%s1983_s15] sm:$0xff] %v1300_v38 }
 0x7d0   :  { %v1302_v40 = vpop.f32.mrf.mxu0 }
 0x7d2   :  { %v1449_v41 = vpop.f32.mrf.mxu0 }
 0x7d3   :  { %1310 = vsyncpa [#allocation3], 1 }
 0x7d4   :  { %1311 = vsyncpa [#allocation5], 1 }
 0x7d5   :  { %1312 = vsyncpa [#allocation8], 1 }

</bundles_post_ra>
